<compile_context>
chip_gen: v6e
topology: v6e:2x2x1
jax: 0.10.0
libtpu: 0.0.40
codegen_flags: <defaults>
</compile_context>

<pallas_src>
import functools

import jax
import jax.numpy as jnp
from jax.experimental import pallas as pl
from jax.experimental.pallas import tpu as pltpu

EPS = 1e-5  # nn.BatchNorm2d default eps


def _derive_vmem_limit():
    """75% of this generation's per-core VMEM; conservative 64 MiB fallback (safe on v7x)."""
    try:
        cap = int(pltpu.get_tpu_info().vmem_capacity_bytes)
    except Exception:  # no / unexpected TPU info -> assume smallest part (v7x: 64 MiB)
        cap = 64 * 1024 * 1024
    return (cap * 3) // 4


VMEM_LIMIT = _derive_vmem_limit()


def _round_up(v, m):
    return (v + m - 1) // m * m


def _pick_tile_m(mp, col_bytes, resident_bytes):
    """Largest lane tile (multiple of 128, <=2048) dividing mp whose double-buffered streamed
    blocks plus resident blocks fit in ~75% of the scoped-VMEM limit."""
    budget = (VMEM_LIMIT * 3) // 4
    for t in (2048, 1024, 512, 256, 128):
        if mp % t == 0 and resident_bytes + 2 * col_bytes * t <= budget:
            return t
    return 128


# ----------------------------- Pallas kernels ------------------------------ #

def _conv_stats_kernel(*refs, fuse_shortcut, cin):
    """Per M-tile: y = W @ P (MXU, f32 acc); stream y out in bf16; accumulate lane-partial
    per-channel sum / sum-of-squares in resident output blocks.  Optionally also computes the
    fused 1x1 stride-2 shortcut conv from the centre-tap rows of the same patch tile."""
    if fuse_shortcut:
        (w_ref, p_ref, wsc_ref,
         y_ref, sum_ref, sq_ref, ysc_ref, ssum_ref, ssq_ref) = refs
    else:
        w_ref, p_ref, y_ref, sum_ref, sq_ref = refs

    i = pl.program_id(1)  # reduction ("arbitrary") axis within this super-chunk

    @pl.when(i == 0)
    def _init():
        sum_ref[...] = jnp.zeros_like(sum_ref)
        sq_ref[...] = jnp.zeros_like(sq_ref)
        if fuse_shortcut:
            ssum_ref[...] = jnp.zeros_like(ssum_ref)
            ssq_ref[...] = jnp.zeros_like(ssq_ref)

    def _accumulate(y, s_out, q_out):
        # Lane-partial accumulation: fold TILE_M -> 128 lanes with cheap VPU adds; the
        # cross-lane reduction happens exactly once, in XLA, after the grid.
        s = jnp.zeros((y.shape[0], 128), jnp.float32)
        q = jnp.zeros((y.shape[0], 128), jnp.float32)
        for j in range(y.shape[1] // 128):
            c = y[:, j * 128:(j + 1) * 128]
            s = s + c
            q = q + c * c
        s_out[...] += s[None]
        q_out[...] += q[None]

    patches = p_ref[...]
    y = jnp.dot(w_ref[...], patches, preferred_element_type=jnp.float32)
    y_ref[...] = y.astype(y_ref.dtype)            # lane-dense [Cout, TILE_M] store
    _accumulate(y, sum_ref, sq_ref)

    if fuse_shortcut:
        centre = patches[4 * cin:5 * cin, :]      # centre tap == 1x1 stride-2 shortcut input
        ysc = jnp.dot(wsc_ref[...], centre, preferred_element_type=jnp.float32)
        ysc_ref[...] = ysc.astype(ysc_ref.dtype)
        _accumulate(ysc, ssum_ref, ssq_ref)


def _affine_kernel(*refs, relu_main, residual_mode):
    """Elementwise BN affine on the cached conv output, optional ReLU, optional residual add
    (+ optional residual affine for the downsample shortcut) and final ReLU."""
    if residual_mode is None:
        y_ref, s_ref, t_ref, o_ref = refs
    elif residual_mode == "raw":
        y_ref, s_ref, t_ref, r_ref, o_ref = refs
    else:  # "affine"
        y_ref, s_ref, t_ref, r_ref, rs_ref, rt_ref, o_ref = refs

    v = y_ref[...].astype(jnp.float32) * s_ref[...] + t_ref[...]
    if relu_main:
        v = jnp.maximum(v, 0.0)
    if residual_mode is not None:
        r = r_ref[...].astype(jnp.float32)
        if residual_mode == "affine":
            r = r * rs_ref[...] + rt_ref[...]
        v = jnp.maximum(v + r, 0.0)
    o_ref[...] = v.astype(o_ref.dtype)            # lane-dense store


# --------------------------- pallas_call wrappers --------------------------- #

def conv_stats(w_t, patches, wsc_t=None, cin=None):
    """w_t:[Cout,K] bf16, patches:[K,Mp] bf16 (Mp % 128 == 0), optional wsc_t:[Cout,Cin] bf16.
    Returns (y, sum, sq[, ysc, ssum, ssq]): y/ysc bf16 [Cout,Mp]; stats f32 [chunks,Cout,128]."""
    cout, k = w_t.shape
    mp = patches.shape[1]
    fuse = wsc_t is not None

    col_bytes = 2 * k + 2 * cout + (2 * cout if fuse else 0)          # streamed bf16 per column
    resident = 2 * cout * k + (2 * cout * (cin or 0) if fuse else 0) \
        + (6 if fuse else 3) * cout * 128 * 4
    tm = _pick_tile_m(mp, col_bytes, resident)
    num_tiles = mp // tm
    nchunks = 2 if (num_tiles >= 2 and num_tiles % 2 == 0) else 1     # v7x: 2 TCs split stats
    tpc = num_tiles // nchunks

    tile_map = lambda p, i: (0, p * tpc + i)
    const_map = lambda p, i: (0, 0)
    stat_map = lambda p, i: (p, 0, 0)

    in_specs = [pl.BlockSpec((cout, k), const_map),                   # weights resident
                pl.BlockSpec((k, tm), tile_map)]                      # patches streamed over M
    args = [w_t, patches]
    if fuse:
        in_specs.append(pl.BlockSpec((cout, cin), const_map))
        args.append(wsc_t)

    y_shape = jax.ShapeDtypeStruct((cout, mp), jnp.bfloat16)
    stat_shape = jax.ShapeDtypeStruct((nchunks, cout, 128), jnp.float32)
    y_spec = pl.BlockSpec((cout, tm), tile_map)
    stat_spec = pl.BlockSpec((1, cout, 128), stat_map)                # resident per super-chunk

    out_shapes = [y_shape, stat_shape, stat_shape]
    out_specs = [y_spec, stat_spec, stat_spec]
    if fuse:
        out_shapes += [y_shape, stat_shape, stat_shape]
        out_specs += [y_spec, stat_spec, stat_spec]

    flops = 2 * mp * k * cout + (2 * mp * (cin or 0) * cout if fuse else 0)
    bytes_accessed = (patches.size * 2 + w_t.size * 2
                      + (wsc_t.size * 2 if fuse else 0)
                      + (2 if fuse else 1) * (cout * mp * 2 + 2 * nchunks * cout * 128 * 4))
    cost = pl.CostEstimate(flops=int(flops), transcendentals=0,
                           bytes_accessed=int(bytes_accessed))

    return pl.pallas_call(
        functools.partial(_conv_stats_kernel, fuse_shortcut=fuse, cin=cin),
        out_shape=tuple(out_shapes),
        grid_spec=pltpu.PrefetchScalarGridSpec(
            num_scalar_prefetch=0,
            grid=(nchunks, tpc),
            in_specs=in_specs,
            out_specs=tuple(out_specs)),
        compiler_params=pltpu.CompilerParams(
            dimension_semantics=("parallel", "arbitrary"),            # chunks || , M-tiles reduce
            vmem_limit_bytes=VMEM_LIMIT),
        cost_estimate=cost,
    )(*args)


def bn_affine(y, scale, shift, *, relu_main, residual=None, res_scale=None, res_shift=None,
              out_dtype):
    """Elementwise y*scale+shift (+ReLU) (+residual [affine] add + ReLU) over [Cout, Mp]."""
    cout, mp = y.shape
    mode = None if residual is None else ("affine" if res_scale is not None else "raw")

    col_bytes = cout * (y.dtype.itemsize + jnp.dtype(out_dtype).itemsize)
    if residual is not None:
        col_bytes += cout * residual.dtype.itemsize
    tm = _pick_tile_m(mp, col_bytes, 6 * cout * 4)

    tile_spec = pl.BlockSpec((cout, tm), lambda i: (0, i))
    vec_spec = pl.BlockSpec((cout, 1), lambda i: (0, 0))

    in_specs = [tile_spec, vec_spec, vec_spec]
    args = [y, scale, shift]
    if residual is not None:
        in_specs.append(pl.BlockSpec((cout, tm), lambda i: (0, i)))
        args.append(residual)
        if mode == "affine":
            in_specs += [vec_spec, vec_spec]
            args += [res_scale, res_shift]

    bytes_accessed = sum(int(a.size) * a.dtype.itemsize for a in args) \
        + cout * mp * jnp.dtype(out_dtype).itemsize
    cost = pl.CostEstimate(flops=int(6 * cout * mp), transcendentals=0,
                           bytes_accessed=int(bytes_accessed))

    return pl.pallas_call(
        functools.partial(_affine_kernel, relu_main=relu_main, residual_mode=mode),
        out_shape=jax.ShapeDtypeStruct((cout, mp), out_dtype),
        grid_spec=pltpu.PrefetchScalarGridSpec(
            num_scalar_prefetch=0,
            grid=(mp // tm,),
            in_specs=in_specs,
            out_specs=pl.BlockSpec((cout, tm), lambda i: (0, i))),
        compiler_params=pltpu.CompilerParams(
            dimension_semantics=("parallel",),                        # M tiles independent
            vmem_limit_bytes=VMEM_LIMIT),
        cost_estimate=cost,
    )(*args)


# ------------------------------ JAX-side glue ------------------------------- #

def _bn_finalize(psum, psq, m_true, gamma, beta):
    """Combine lane/chunk-partial sums into BN scale/shift (training-mode batch statistics,
    biased variance, clamped >= 0 against f32 cancellation)."""
    s = jnp.sum(psum, axis=(0, 2))
    q = jnp.sum(psq, axis=(0, 2))
    mean = s / m_true
    var = jnp.maximum(q / m_true - mean * mean, 0.0)
    scale = gamma * jax.lax.rsqrt(var + EPS)
    shift = beta - mean * scale
    return (scale.reshape(-1, 1).astype(jnp.float32),
            shift.reshape(-1, 1).astype(jnp.float32))


def _im2col_cnhw(x_cnhw, k, stride, pad):
    """[C,N,H,W] -> patches^T [k*k*C, N*Ho*Wo]  (K index = tap-major, channel-fastest)."""
    c, n, h, w = x_cnhw.shape
    xp = jnp.pad(x_cnhw, ((0, 0), (0, 0), (pad, pad), (pad, pad)))
    ho = (h + 2 * pad - k) // stride + 1
    wo = (w + 2 * pad - k) // stride + 1
    taps = []
    for dy in range(k):
        for dx in range(k):
            taps.append(xp[:, :, dy:dy + stride * ho:stride, dx:dx + stride * wo:stride])
    pt = jnp.stack(taps, axis=0)                             # [k*k, C, N, Ho, Wo]
    return pt.reshape(k * k * c, n * ho * wo), (n, ho, wo)


def _flatten_w_t(w_oihw):
    """PyTorch [Cout,Cin,Kh,Kw] -> [Cout, Kh*Kw*Cin] matching _im2col_cnhw K ordering."""
    cout, cin, kh, kw = w_oihw.shape
    return jnp.transpose(w_oihw, (0, 2, 3, 1)).reshape(cout, kh * kw * cin)


def _pad_m(a, mp):
    m = a.shape[1]
    return a if m == mp else jnp.pad(a, ((0, 0), (0, mp - m)))


def init_params(key, cin, cout, downsample):
    ks = jax.random.split(key, 16)
    p = {
        "w1": 0.1 * jax.random.normal(ks[0], (cout, cin, 3, 3), jnp.float32),
        "b1": 0.1 * jax.random.normal(ks[1], (cout,), jnp.float32),
        "g1": 1.0 + 0.1 * jax.random.normal(ks[2], (cout,), jnp.float32),
        "beta1": 0.1 * jax.random.normal(ks[3], (cout,), jnp.float32),
        "w2": 0.1 * jax.random.normal(ks[4], (cout, cout, 3, 3), jnp.float32),
        "b2": 0.1 * jax.random.normal(ks[5], (cout,), jnp.float32),
        "g2": 1.0 + 0.1 * jax.random.normal(ks[6], (cout,), jnp.float32),
        "beta2": 0.1 * jax.random.normal(ks[7], (cout,), jnp.float32),
    }
    if downsample:
        p.update({
            "wsc": 0.1 * jax.random.normal(ks[8], (cout, cin, 1, 1), jnp.float32),
            "bsc": 0.1 * jax.random.normal(ks[9], (cout,), jnp.float32),
            "gsc": 1.0 + 0.1 * jax.random.normal(ks[10], (cout,), jnp.float32),
            "betasc": 0.1 * jax.random.normal(ks[11], (cout,), jnp.float32),
        })
    return p


def resblock_forward(x_nchw, p, downsample):
    """Pallas implementation of ResBlock.forward.  Input/output NCHW (like PyTorch)."""
    bf = jnp.bfloat16
    x = jnp.transpose(x_nchw, (1, 0, 2, 3)).astype(jnp.float32)      # [Cin, N, H, W]
    cin = x.shape[0]
    cout = p["w1"].shape[0]
    stride1 = 2 if downsample else 1

    # --- conv1 (+ fused 1x1 shortcut when downsampling): stats pass + cached conv output ---
    # TODO(synk): build these im2col patches in-kernel from a haloed activation tile.
    p1, (n, ho, wo) = _im2col_cnhw(x, 3, stride1, 1)
    m = n * ho * wo
    mp = _round_up(m, 128)
    p1 = _pad_m(p1, mp).astype(bf)
    w1 = _flatten_w_t(p["w1"]).astype(bf)

    if downsample:
        wsc = _flatten_w_t(p["wsc"]).astype(bf)                      # [Cout, Cin] (1x1 conv)
        y1, s1, q1, ysc, ssc_sum, ssc_sq = conv_stats(w1, p1, wsc_t=wsc, cin=cin)
        sc_scale, sc_shift = _bn_finalize(ssc_sum, ssc_sq, m, p["gsc"], p["betasc"])
    else:
        y1, s1, q1 = conv_stats(w1, p1)
    scale1, shift1 = _bn_finalize(s1, q1, m, p["g1"], p["beta1"])

    # --- bn1 + relu: pure elementwise apply on the cached conv1 output ---
    h1 = bn_affine(y1, scale1, shift1, relu_main=True, out_dtype=bf)
    h1 = h1[:, :m].reshape(cout, n, ho, wo)

    # --- conv2: stats pass + cached conv output ---
    p2, _ = _im2col_cnhw(h1, 3, 1, 1)
    p2 = _pad_m(p2, mp)
    w2 = _flatten_w_t(p["w2"]).astype(bf)
    y2, s2, q2 = conv_stats(w2, p2)
    scale2, shift2 = _bn_finalize(s2, q2, m, p["g2"], p["beta2"])

    # --- bn2 + relu + residual add + relu: single elementwise kernel ---
    if downsample:
        out = bn_affine(y2, scale2, shift2, relu_main=True,
                        residual=ysc, res_scale=sc_scale, res_shift=sc_shift,
                        out_dtype=jnp.float32)
    else:
        res = _pad_m(x.reshape(cin, -1), mp)                         # identity shortcut, f32
        out = bn_affine(y2, scale2, shift2, relu_main=True,
                        residual=res, out_dtype=jnp.float32)

    out = out[:, :m].reshape(cout, n, ho, wo)
    return jnp.transpose(out, (1, 0, 2, 3))                          # back to NCHW


# ------------------------------ pure-JAX reference --------------------------- #

def _ref_conv(x_nhwc, w_oihw, b, stride, pad):
    w_hwio = jnp.transpose(w_oihw, (2, 3, 1, 0))
    y = jax.lax.conv_general_dilated(
        x_nhwc, w_hwio, (stride, stride), [(pad, pad), (pad, pad)],
        dimension_numbers=("NHWC", "HWIO", "NHWC"),
        precision=jax.lax.Precision.HIGHEST)
    return y + b


def _ref_bn(y, g, bt):
    mean = jnp.mean(y, axis=(0, 1, 2), keepdims=True)
    var = jnp.mean(jnp.square(y - mean), axis=(0, 1, 2), keepdims=True)
    return (y - mean) * jax.lax.rsqrt(var + EPS) * g + bt


def ref_forward(x_nchw, p, downsample):
    x = jnp.transpose(x_nchw, (0, 2, 3, 1)).astype(jnp.float32)
    stride1 = 2 if downsample else 1
    h = jax.nn.relu(_ref_bn(_ref_conv(x, p["w1"], p["b1"], stride1, 1), p["g1"], p["beta1"]))
    h = jax.nn.relu(_ref_bn(_ref_conv(h, p["w2"], p["b2"], 1, 1), p["g2"], p["beta2"]))
    if downsample:
        sc = _ref_bn(_ref_conv(x, p["wsc"], p["bsc"], 2, 0), p["gsc"], p["betasc"])
    else:
        sc = x
    return jnp.transpose(jax.nn.relu(h + sc), (0, 3, 1, 2))


# ----------------------------------- main ----------------------------------- #

if __name__ == "__main__":
    key = jax.random.PRNGKey(0)
    kx, kp1, kp2, kx3, kx4 = jax.random.split(key, 5)

    x = jax.random.normal(kx, (2, 4, 16, 16), jnp.float32)   # NCHW, like PyTorch

    # case 1: no downsample, identity shortcut (in_channels == out_channels)
    params_a = init_params(kp1, cin=4, cout=4, downsample=False)
    out_a = jax.block_until_ready(resblock_forward(x, params_a, downsample=False))
    ref_a = ref_forward(x, params_a, downsample=False)
    assert out_a.shape == (2, 4, 16, 16)
    assert jnp.allclose(out_a, ref_a, rtol=5e-2, atol=5e-2), "mismatch (no downsample)"

    # case 2: downsample, fused 1x1-conv + BN shortcut (stride 2, channel change)
    params_b = init_params(kp2, cin=4, cout=8, downsample=True)
    out_b = jax.block_until_ready(resblock_forward(x, params_b, downsample=True))
    ref_b = ref_forward(x, params_b, downsample=True)
    assert out_b.shape == (2, 8, 8, 8)
    assert jnp.allclose(out_b, ref_b, rtol=5e-2, atol=5e-2), "mismatch (downsample)"

    # case 3: batch 4 -> M = 1024 (larger single-tile path)
    x3 = jax.random.normal(kx3, (4, 4, 16, 16), jnp.float32)
    out_c = jax.block_until_ready(resblock_forward(x3, params_a, downsample=False))
    ref_c = ref_forward(x3, params_a, downsample=False)
    assert out_c.shape == (4, 4, 16, 16)
    assert jnp.allclose(out_c, ref_c, rtol=5e-2, atol=5e-2), "mismatch (batch 4)"

    # case 4: batch 32 -> M = 8192 -> multi-tile grid exercises the resident-output BN
    # accumulation and the 2-way "parallel" stats super-chunk split (v7x megacore path).
    x4 = jax.random.normal(kx4, (32, 4, 16, 16), jnp.float32)
    out_d = jax.block_until_ready(resblock_forward(x4, params_a, downsample=False))
    ref_d = ref_forward(x4, params_a, downsample=False)
    assert out_d.shape == (32, 4, 16, 16)
    assert jnp.allclose(out_d, ref_d, rtol=5e-2, atol=5e-2), "mismatch (multi-tile)"

    print("KERNEL_OK")
</pallas_src>

<mosaic_0001>
module attributes {stable_mosaic.version = 11 : i64} {
  func.func @_conv_stats_kernel(%arg0: i32, %arg1: i32, %arg2: memref<4x36xbf16, #tpu.memory_space<vmem>>, %arg3: memref<36x512xbf16, #tpu.memory_space<vmem>>, %arg4: memref<4x512xbf16, #tpu.memory_space<vmem>>, %arg5: memref<1x4x128xf32, #tpu.memory_space<vmem>>, %arg6: memref<1x4x128xf32, #tpu.memory_space<vmem>>) attributes {dimension_semantics = [#tpu.dimension_semantics<parallel>, #tpu.dimension_semantics<arbitrary>], iteration_bounds = array<i64: 1, 1>, scalar_prefetch = 0 : i64, scratch_operands = 0 : i64, tpu.core_type = #tpu.core_type<tc>, window_params = [{pipeline_mode = #tpu.pipeline_mode<synchronous>, transform_indices = @transform_0, window_bounds = array<i64: 4, 36>}, {transform_indices = @transform_1, window_bounds = array<i64: 36, 512>}, {transform_indices = @transform_2, window_bounds = array<i64: 4, 512>}, {transform_indices = @transform_3, window_bounds = array<i64: 1, 4, 128>}, {transform_indices = @transform_4, window_bounds = array<i64: 1, 4, 128>}]} {
    %c0_i32 = arith.constant 0 : i32
    %0 = arith.cmpi eq, %arg1, %c0_i32 : i32
    %1 = arith.extui %0 : i1 to i32
    %c0_i32_0 = arith.constant 0 : i32
    %2 = arith.cmpi ne, %1, %c0_i32_0 : i32
    scf.if %2 {
      %cst_20 = arith.constant 0.000000e+00 : f32
      %34 = vector.broadcast %cst_20 : f32 to vector<1x4x128xf32>
      %c0_21 = arith.constant 0 : index
      %c0_22 = arith.constant 0 : index
      %c0_23 = arith.constant 0 : index
      %35 = vector.load %arg5[%c0_21, %c0_22, %c0_23] : memref<1x4x128xf32, #tpu.memory_space<vmem>>, vector<1x4x128xf32>
      tpu.vector_store %arg5[%c0_21, %c0_22, %c0_23], %34 {strides = array<i32>} : memref<1x4x128xf32, #tpu.memory_space<vmem>>, vector<1x4x128xf32>,
      %cst_24 = arith.constant 0.000000e+00 : f32
      %36 = vector.broadcast %cst_24 : f32 to vector<1x4x128xf32>
      %c0_25 = arith.constant 0 : index
      %c0_26 = arith.constant 0 : index
      %c0_27 = arith.constant 0 : index
      %37 = vector.load %arg6[%c0_25, %c0_26, %c0_27] : memref<1x4x128xf32, #tpu.memory_space<vmem>>, vector<1x4x128xf32>
      tpu.vector_store %arg6[%c0_25, %c0_26, %c0_27], %36 {strides = array<i32>} : memref<1x4x128xf32, #tpu.memory_space<vmem>>, vector<1x4x128xf32>,
    } else {
    }
    %c0 = arith.constant 0 : index
    %c0_1 = arith.constant 0 : index
    %3 = vector.load %arg3[%c0, %c0_1] : memref<36x512xbf16, #tpu.memory_space<vmem>>, vector<36x512xbf16>
    %c0_2 = arith.constant 0 : index
    %c0_3 = arith.constant 0 : index
    %4 = vector.load %arg2[%c0_2, %c0_3] : memref<4x36xbf16, #tpu.memory_space<vmem>>, vector<4x36xbf16>
    %cst = arith.constant dense<0.000000e+00> : vector<4x512xf32>
    %5 = tpu.matmul %4, %3, %cst {dimension_numbers = #tpu.dot_dimension_numbers<[1], [0], [0], [1], [0, 0, 1, 1], [], []>} : vector<4x36xbf16>, vector<36x512xbf16>, vector<4x512xf32> -> vector<4x512xf32>
    %6 = arith.truncf %5 : vector<4x512xf32> to vector<4x512xbf16>
    %c0_4 = arith.constant 0 : index
    %c0_5 = arith.constant 0 : index
    %7 = vector.load %arg4[%c0_4, %c0_5] : memref<4x512xbf16, #tpu.memory_space<vmem>>, vector<4x512xbf16>
    tpu.vector_store %arg4[%c0_4, %c0_5], %6 {strides = array<i32>} : memref<4x512xbf16, #tpu.memory_space<vmem>>, vector<4x512xbf16>,
    %cst_6 = arith.constant 0.000000e+00 : f32
    %8 = vector.broadcast %cst_6 : f32 to vector<4x128xf32>
    %cst_7 = arith.constant 0.000000e+00 : f32
    %9 = vector.broadcast %cst_7 : f32 to vector<4x128xf32>
    %10 = vector.extract_strided_slice %5 {offsets = [0, 0], sizes = [4, 128], strides = [1, 1]} : vector<4x512xf32> to vector<4x128xf32>
    %11 = arith.addf %8, %10 : vector<4x128xf32>
    %12 = arith.mulf %10, %10 : vector<4x128xf32>
    %13 = arith.addf %9, %12 : vector<4x128xf32>
    %14 = vector.extract_strided_slice %5 {offsets = [0, 128], sizes = [4, 128], strides = [1, 1]} : vector<4x512xf32> to vector<4x128xf32>
    %15 = arith.addf %11, %14 : vector<4x128xf32>
    %16 = arith.mulf %14, %14 : vector<4x128xf32>
    %17 = arith.addf %13, %16 : vector<4x128xf32>
    %18 = vector.extract_strided_slice %5 {offsets = [0, 256], sizes = [4, 128], strides = [1, 1]} : vector<4x512xf32> to vector<4x128xf32>
    %19 = arith.addf %15, %18 : vector<4x128xf32>
    %20 = arith.mulf %18, %18 : vector<4x128xf32>
    %21 = arith.addf %17, %20 : vector<4x128xf32>
    %22 = vector.extract_strided_slice %5 {offsets = [0, 384], sizes = [4, 128], strides = [1, 1]} : vector<4x512xf32> to vector<4x128xf32>
    %23 = arith.addf %19, %22 : vector<4x128xf32>
    %24 = arith.mulf %22, %22 : vector<4x128xf32>
    %25 = arith.addf %21, %24 : vector<4x128xf32>
    %c0_8 = arith.constant 0 : index
    %c0_9 = arith.constant 0 : index
    %c0_10 = arith.constant 0 : index
    %26 = vector.load %arg5[%c0_8, %c0_9, %c0_10] : memref<1x4x128xf32, #tpu.memory_space<vmem>>, vector<1x4x128xf32>
    %27 = vector.shape_cast %23 : vector<4x128xf32> to vector<1x4x128xf32>
    %28 = arith.addf %26, %27 : vector<1x4x128xf32>
    %c0_11 = arith.constant 0 : index
    %c0_12 = arith.constant 0 : index
    %c0_13 = arith.constant 0 : index
    %29 = vector.load %arg5[%c0_11, %c0_12, %c0_13] : memref<1x4x128xf32, #tpu.memory_space<vmem>>, vector<1x4x128xf32>
    tpu.vector_store %arg5[%c0_11, %c0_12, %c0_13], %28 {strides = array<i32>} : memref<1x4x128xf32, #tpu.memory_space<vmem>>, vector<1x4x128xf32>,
    %c0_14 = arith.constant 0 : index
    %c0_15 = arith.constant 0 : index
    %c0_16 = arith.constant 0 : index
    %30 = vector.load %arg6[%c0_14, %c0_15, %c0_16] : memref<1x4x128xf32, #tpu.memory_space<vmem>>, vector<1x4x128xf32>
    %31 = vector.shape_cast %25 : vector<4x128xf32> to vector<1x4x128xf32>
    %32 = arith.addf %30, %31 : vector<1x4x128xf32>
    %c0_17 = arith.constant 0 : index
    %c0_18 = arith.constant 0 : index
    %c0_19 = arith.constant 0 : index
    %33 = vector.load %arg6[%c0_17, %c0_18, %c0_19] : memref<1x4x128xf32, #tpu.memory_space<vmem>>, vector<1x4x128xf32>
    tpu.vector_store %arg6[%c0_17, %c0_18, %c0_19], %32 {strides = array<i32>} : memref<1x4x128xf32, #tpu.memory_space<vmem>>, vector<1x4x128xf32>,
    return
  }
  func.func @transform_0(%arg0: i32, %arg1: i32) -> (i32, i32) {
    %c0_i32 = arith.constant 0 : i32
    %c0_i32_0 = arith.constant 0 : i32
    %c0_i32_1 = arith.constant 0 : i32
    return %c0_i32, %c0_i32_0 : i32, i32
  }
  func.func @transform_1(%arg0: i32, %arg1: i32) -> (i32, i32) {
    %c1_i32 = arith.constant 1 : i32
    %0 = arith.muli %arg0, %c1_i32 : i32
    %1 = arith.addi %0, %arg1 : i32
    %c0_i32 = arith.constant 0 : i32
    %c0_i32_0 = arith.constant 0 : i32
    return %c0_i32, %1 : i32, i32
  }
  func.func @transform_2(%arg0: i32, %arg1: i32) -> (i32, i32) {
    %c1_i32 = arith.constant 1 : i32
    %0 = arith.muli %arg0, %c1_i32 : i32
    %1 = arith.addi %0, %arg1 : i32
    %c0_i32 = arith.constant 0 : i32
    %c0_i32_0 = arith.constant 0 : i32
    return %c0_i32, %1 : i32, i32
  }
  func.func @transform_3(%arg0: i32, %arg1: i32) -> (i32, i32, i32) {
    %c0_i32 = arith.constant 0 : i32
    %c0_i32_0 = arith.constant 0 : i32
    %c0_i32_1 = arith.constant 0 : i32
    return %arg0, %c0_i32, %c0_i32_0 : i32, i32, i32
  }
  func.func @transform_4(%arg0: i32, %arg1: i32) -> (i32, i32, i32) {
    %c0_i32 = arith.constant 0 : i32
    %c0_i32_0 = arith.constant 0 : i32
    %c0_i32_1 = arith.constant 0 : i32
    return %arg0, %c0_i32, %c0_i32_0 : i32, i32, i32
  }
}

</mosaic_0001>

<bundles_post_ra>
// kernel: tpu_custom_call.1
= control target key start
LH: loop header
LB: loop body
LE: loop exit
PB: predicated region body
PF: predicated region fallthrough
CT: control target
= control target key end

     0   :  { %10 = vsyncpa [#allocation3], 0  ;;  %s511_s0 = inlined_call_operand.hbm [shape: bf16[4,36], index: 0, kind: input, shape index: {}]   ;;  %s512_s1 = inlined_call_operand.hbm [shape: bf16[36,512], index: 1, kind: input, shape index: {}]   ;;  %s513_s2 = inlined_call_operand.hbm [shape: bf16[4,512], index: 2, kind: output, shape index: {0}]   ;;  %s514_s3 = inlined_call_operand.hbm [shape: f32[1,4,128], index: 3, kind: output, shape index: {1}]   ;;  %s515_s4 = inlined_call_operand.hbm [shape: f32[1,4,128], index: 4, kind: output, shape index: {2}]  }
   0x1   :  { %11 = vsyncpa [#allocation6], 0 }
   0x2   :  { %12 = vsyncpa [#allocation4], 0 }
   0x3   :  { %13 = vsyncpa [#allocation9], 0  ;;  %s461_s15 = smov [#allocation2]   ;;  %s462_s17 = smov [#allocation5]  }
   0x4   :  { %s20_s16 = sshll.u32 %s461_s15, 4  ;;  %s33_s18 = sshll.u32 %s462_s17, 4  ;;  %s21_s16 = int_to_ptr.vmem [resolvable:$true] %s20_s16  ;;  %s34_s18 = int_to_ptr.vmem [resolvable:$true] %s33_s18 }
   0x5   :  { %s361_s19 = scalar_lea.vmem %s21_s16, 32  ;;  %p366_p1 = scmp.lt.s32.totalorder %s21_s16, %s21_s16 }
   0x6   :  { %p362_p0 = scmp.ne.s32.totalorder %s21_s16, %s361_s19  ;;  %p367_p2 = scmp.lt.s32.totalorder %s361_s19, %s361_s19 }
   0x8   :  { %p368_p3 = por %p367_p2, %p366_p1 }
   0xa   :  { %p369_p4 = pnand %p368_p3, %p362_p0 }
   0xc   :  { %372 = shalt.err (!%p369_p4)
}
   0xd   :  { %23 = dma.hbm_to_vmem [thread:$0]  %s511_s0, 32, %s21_s16, [#allocation3]  }
   0xe   :  { %s381_s22 = scalar_lea.vmem %s34_s18, 1280  ;;  %p386_p6 = scmp.lt.s32.totalorder %s34_s18, %s34_s18 }
   0xf   :  { %p382_p5 = scmp.ne.s32.totalorder %s34_s18, %s381_s22  ;;  %p387_p7 = scmp.lt.s32.totalorder %s381_s22, %s381_s22 }
  0x11   :  { %p388_p8 = por %p387_p7, %p386_p6 }
  0x13   :  { %p389_p9 = pnand %p388_p8, %p382_p5 }
  0x15   :  { %392 = shalt.err (!%p389_p9)
}
  0x16   :  { %s463_s23 = smov 256   ;;  %s464_s24 = smov 16  }
  0x17   :  { %39 = dma.hbm_to_vmem [thread:$0]  %s512_s1, 1280, %s34_s18, [#allocation6], %s463_s23, %s463_s23, %s464_s24  }
  0x18   :  { %453 = dma.done.wait [#allocation3], 32  }
  0x19   :  { %454 = vsyncadd [#allocation3], 4294967264 }
  0x1a   :  { %455 = dma.done.wait [#allocation6], 1280  }
  0x1b   :  { %456 = vsyncadd [#allocation6], 4294966016  ;;  %v465_v0 = vmov 0   ;;  %v65_v1 = vld [vmem:[#allocation5 + $0x40] sm:$0x33]  ;;  %vm122_vm0 = vcmask 1041408   ;;  %v230_v21 = vlaneseq }
  0x1c   :  { %167 = vmatprep.mubr.bf16.mxu0 %v465_v0  ;;  %208 = vmatprep.mubr.bf16.mxu1 %v465_v0  ;;  %v66_v2 = vld [vmem:[#allocation5 + $0x48] sm:$0x33]  ;;  %v318_v3 = vcombine.high %v65_v1, %v65_v1  ;;  %v317_v5 = vcombine.low %v65_v1, %v65_v1  ;;  %v341_v7 = vld [vmem:[#allocation5 + $0x24] ss:$16 sps:$4 sm:$0xff]   ;;  %v345_v11 = vld [vmem:[#allocation5 + $0x20] ss:$16 sps:$4 sm:$0xff]  }
  0x1d   :  { %v320_v4 = vcombine.high %v66_v2, %v66_v2  ;;  %v319_v6 = vcombine.low %v66_v2, %v66_v2  ;;  %v343_v8 = vld [vmem:[#allocation5 + $0x2c] ss:$16 sps:$4 sm:$0xff]   ;;  %v346_v12 = vld [vmem:[#allocation5 + $0x28] ss:$16 sps:$4 sm:$0xff]   ;;  %v347_v13 = vld [vmem:[#allocation5 + $0x4] ss:$16 sps:$4 sm:$0xff]  }
  0x1e   :  { %321 = vmatprep.subr.msk.bf16.mxu0 %vm122_vm0, %v318_v3  ;;  %v124_v9 = vsel %vm122_vm0, %v317_v5, 0  ;;  %v349_v14 = vld [vmem:[#allocation5 + $0xc] ss:$16 sps:$4 sm:$0xff]   ;;  %v351_v15 = vld [vmem:[#allocation5] ss:$16 sps:$4 sm:$0xff]   ;;  %vm118_vm1 = vcmask 293888  }
  0x1f   :  { %323 = vmatprep.subr.msk.bf16.mxu1 %vm122_vm0, %v320_v4  ;;  %v130_v10 = vsel %vm122_vm0, %v319_v6, 0  ;;  %146 = vmatpush1.bf16.msra.mxu0 %v124_v9  ;;  %v352_v16 = vld [vmem:[#allocation5 + $0x8] ss:$16 sps:$4 sm:$0xff]   ;;  %v67_v17 = vld [vmem:[#allocation2] sm:$0x3]  ;;  %v466_v18 = vmov 0.0  }
  0x20   :  { %187 = vmatpush1.bf16.msra.mxu1 %v130_v10  ;;  %147 = vmatprep.subr.bf16.mxu0 %v341_v7  ;;  %55 = vst [vmem:[#allocation8] sm:$0xf] %v466_v18  ;;  %56 = vst [vmem:[#allocation10] sm:$0xf] %v466_v18  ;;  %v467_v19 = vmov 1983009808  }
  0x21   :  { %188 = vmatprep.subr.bf16.mxu1 %v343_v8  ;;  %v228_v20 = vunpack.c.l.s4 %v467_v19  ;;  %v231_v23 = vshrl.u32 %v230_v21, 7  ;;  %s468_s0 = smov [#allocation7]   ;;  %s469_s27 = smov [#allocation8]  }
  0x22   :  { %s272_s1 = sshll.u32 %s468_s0, 4  ;;  %s282_s28 = sshll.u32 %s469_s27, 4  ;;  %s273_s1 = int_to_ptr.vmem [resolvable:$true] %s272_s1  ;;  %s283_s28 = int_to_ptr.vmem [resolvable:$true] %s282_s28 }
  0x23   :  { %148 = vmatpush1.bf16.msra.mxu0 %v345_v11  ;;  %v229_v22 = vunpack.c.0.s8 %v228_v20  ;;  %s470_s29 = smov [#allocation10]   ;;  %s393_s5 = scalar_lea.vmem %s273_s1, 128 }
  0x24   :  { %189 = vmatpush1.bf16.msra.mxu1 %v346_v12  ;;  %149 = vmatprep.subr.bf16.mxu0 %v347_v13  ;;  %s292_s30 = sshll.u32 %s470_s29, 4  ;;  %p394_p10 = scmp.ne.s32.totalorder %s273_s1, %s393_s5  ;;  %s293_s30 = int_to_ptr.vmem [resolvable:$true] %s292_s30 }
  0x25   :  { %190 = vmatprep.subr.bf16.mxu1 %v349_v14  ;;  %v232_v26 = vsub.s32 %v229_v22, %v231_v23  ;;  %p398_p11 = scmp.lt.s32.totalorder %s273_s1, %s273_s1  ;;  %p399_p12 = scmp.lt.s32.totalorder %s393_s5, %s393_s5 }
  0x27   :  { %150 = vmatpush1.bf16.msra.mxu0 %v351_v15  ;;  %v256_v41 = vld [vmem:[#allocation8] sm:$0xf]  ;;  %v259_v48 = vld [vmem:[#allocation10] sm:$0xf]  ;;  %p400_p13 = por %p399_p12, %p398_p11 }
  0x28   :  { %191 = vmatpush1.bf16.msra.mxu1 %v352_v16 }
  0x29   :  { %p401_p0 = pnand %p400_p13, %p394_p10 }
  0x2a   :  { %322 = vmatmul.mubr.msk.bf16.vlgmr.msra.gmra.mxu0 %vm118_vm1, %v67_v17 }
  0x2b   :  { %324 = vmatmul.mubr.msk.bf16.vlgmr.msra.gmra.mxu1 %vm118_vm1, %v67_v17 }
  0xea   :  { %v169_v24 = vpop.f32.mrf.mxu0 }
  0xeb   :  { %v210_v25 = vpop.f32.mrf.mxu1  ;;  %v245_v27 = vmul.f32 %v169_v24, %v169_v24 }
  0xec   :  { %v251_v28 = vmul.f32 %v210_v25, %v210_v25  ;;  %v171_v29 = vpop.f32.mrf.mxu0 }
  0xed   :  { %v212_v30 = vpop.f32.mrf.mxu1  ;;  %v325_v31 = vpack.c.bf16 %v171_v29, %v169_v24  ;;  %v247_v32 = vadd.f32 %v171_v29, %v169_v24  ;;  %v248_v33 = vmul.f32 %v171_v29, %v171_v29 }
  0xee   :  { %v326_v34 = vpack.c.bf16 %v212_v30, %v210_v25  ;;  %v173_v35 = vpop.f32.mrf.mxu0  ;;  %v254_v46 = vmul.f32 %v212_v30, %v212_v30 }
  0xef   :  { %v214_v36 = vpop.f32.mrf.mxu1  ;;  %v233_v37 = vrot.slane %v325_v31, %v232_v26  ;;  %v249_v38 = vadd.f32 %v248_v33, %v245_v27  ;;  %v250_v40 = vadd.f32 %v247_v32, %v210_v25 }
  0xf0   :  { %v240_v39 = vrot.slane %v326_v34, %v232_v26  ;;  %v174_v42 = vpop.f32.mrf.mxu0 }
  0xf1   :  { %v215_v43 = vpop.f32.mrf.mxu1  ;;  %v252_v44 = vadd.f32 %v251_v28, %v249_v38  ;;  %v253_v45 = vadd.f32 %v250_v40, %v212_v30 }
  0xf2   :  { %v241_v47 = vcombine.low %v233_v37, %v240_v39 }
  0xf3   :  { %v255_v49 = vadd.f32 %v254_v46, %v252_v44  ;;  %v257_v50 = vadd.f32 %v256_v41, %v253_v45 }
  0xf4   :  { %243 = vst [vmem:[#allocation7] sm:$0xff] %v241_v47 }
  0xf5   :  { %404 = shalt.err (!%p401_p0)
}
  0xf6   :  { %275 = dma.vmem_to_hbm [thread:$0]  %s273_s1, 128, %s513_s2, [#allocation4]   ;;  %v260_v51 = vadd.f32 %v259_v48, %v255_v49  ;;  %258 = vst [vmem:[#allocation8] sm:$0xf] %v257_v50 }
  0xf7   :  { %s413_s8 = scalar_lea.vmem %s283_s28, 64  ;;  %p418_p2 = scmp.lt.s32.totalorder %s283_s28, %s283_s28 }
  0xf8   :  { %p414_p1 = scmp.ne.s32.totalorder %s283_s28, %s413_s8  ;;  %p419_p3 = scmp.lt.s32.totalorder %s413_s8, %s413_s8 }
  0xfa   :  { %p420_p4 = por %p419_p3, %p418_p2 }
  0xfc   :  { %p421_p5 = pnand %p420_p4, %p414_p1 }
  0xfe   :  { %424 = shalt.err (!%p421_p5)
}
  0xff   :  { %285 = dma.vmem_to_hbm [thread:$0]  %s283_s28, 64, %s514_s3, [#allocation9]   ;;  %261 = vst [vmem:[#allocation10] sm:$0xf] %v260_v51 }
 0x100   :  { %s433_s11 = scalar_lea.vmem %s293_s30, 64  ;;  %p438_p7 = scmp.lt.s32.totalorder %s293_s30, %s293_s30 }
 0x101   :  { %p434_p6 = scmp.ne.s32.totalorder %s293_s30, %s433_s11  ;;  %p439_p8 = scmp.lt.s32.totalorder %s433_s11, %s433_s11 }
 0x103   :  { %p440_p9 = por %p439_p8, %p438_p7 }
 0x105   :  { %p441_p10 = pnand %p440_p9, %p434_p6 }
 0x107   :  { %444 = shalt.err (!%p441_p10)
}
 0x108   :  { %295 = dma.vmem_to_hbm [thread:$0]  %s293_s30, 64, %s515_s4, [#allocation9]  }
 0x109   :  { %457 = dma.done.wait [#allocation4], 128  }
 0x10a   :  { %458 = vsyncadd [#allocation4], 4294967168 }
 0x10b   :  { %459 = dma.done.wait [#allocation9], 128  }
 0x10c   :  { %460 = vsyncadd [#allocation9], 4294967168 }
 0x10d   :  { %305 = vsyncpa [#allocation3], 1 }
 0x10e   :  { %306 = vsyncpa [#allocation6], 1 }
 0x10f   :  { %307 = vsyncpa [#allocation4], 1 }
 0x110   :  { %308 = vsyncpa [#allocation9], 1 }

</bundles_post_ra>
